<compile_context>
chip_gen: v5e
topology: v5e:2x2
jax: 0.10.0
libtpu: 0.0.40
codegen_flags: <defaults>
</compile_context>

<pallas_src>
import math
import jax
import jax.numpy as jnp
from jax.experimental import pallas as pl
from jax.experimental.pallas import tpu as pltpu

# ----------------------------- model config (small, synthetic) ---------------
BATCH = 2
OBS_C, OBS_H, OBS_W = 4, 16, 16          # obs_shape
ACTION_DIM = 6                            # action_shape[0]
ACTION_PAD = 8                            # action padded to 8 lanes
HIDDEN_DIM = 32
FEATURE_DIM = 16                          # encoder_feature_dim
NUM_LAYERS = 2
NUM_FILTERS = 8
LN_EPS = 1e-5
LIKELIHOOD_BOUND = 1e-9

# derived sizes / aligned layout constants
OH1 = (OBS_H - 3) // 2 + 1                # 7   conv1 (k=3, s=2) output size
OH2 = OH1 - 2                             # 5   conv2 (k=3, s=1) output size
TAP1 = 32                                 # lane-aligned per-tap stride for conv1 (28 valid)
CW = 64                                   # lane-aligned activation row width (56 / 40 valid)
R1 = 16                                   # padded conv1 rows: OH1*BATCH=14 -> 16
R2 = OH2 * BATCH                          # 10  conv2 rows, order (oh2, b)
K1 = 9 * TAP1                             # 288 conv1 contraction width
OUT_W = 32                                # packed output: [0:16) lik, [16:18) q1/q2
FLAT_DIM = NUM_FILTERS * OH2 * OH2        # 200

_VMEM = pl.BlockSpec(memory_space=pltpu.MemorySpace.VMEM)


# ----------------------------- the fused Pallas kernel ------------------------
def _critic_fused_kernel(p1_ref, act_ref, wenc_ref, wfc_ref, wq_ref, bias_ref,
                         out_ref, h1_ref, h2_ref):
    f32 = jnp.float32
    bf16 = jnp.bfloat16

    # ---- conv1 (3x3, stride 2): single MXU contraction; im2col done in wrapper
    h1 = jnp.dot(p1_ref[...], wenc_ref[0:K1, :], preferred_element_type=f32)
    h1 = jnp.maximum(h1 + bias_ref[0:1, 0:CW], 0.0)          # (16, 64) rows=(oh1, b)
    h1_ref[...] = h1                                         # stage for sublane-offset vlds

    # ---- conv2 (3x3, stride 1): 3 kh-shifted dots vs banded tap weights -------
    acc = jnp.zeros((R2, CW), f32) + bias_ref[1:2, 0:CW]
    for kh in range(3):
        a = h1_ref[kh * BATCH: kh * BATCH + R2, :].astype(bf16)
        acc = acc + jnp.dot(a, wenc_ref[K1 + kh * CW: K1 + (kh + 1) * CW, :],
                            preferred_element_type=f32)
    h2 = jnp.maximum(acc, 0.0)                               # (10, 64) rows=(oh2, b)
    h2_ref[0:R2, :] = h2

    # ---- flatten + fc folded into 5 contiguous row-pair dots (no flat scratch)
    hf = jnp.zeros((BATCH, FEATURE_DIM), f32) + bias_ref[2:3, 0:FEATURE_DIM]
    for oh in range(OH2):
        a = h2_ref[oh * BATCH:(oh + 1) * BATCH, :].astype(bf16)
        hf = hf + jnp.dot(a, wfc_ref[oh * CW:(oh + 1) * CW, :],
                          preferred_element_type=f32)

    # ---- LayerNorm -> tanh -----------------------------------------------------
    mu = jnp.mean(hf, axis=-1, keepdims=True)
    var = jnp.mean((hf - mu) ** 2, axis=-1, keepdims=True)
    feat = jnp.tanh((hf - mu) * jax.lax.rsqrt(var + LN_EPS)
                    * bias_ref[3:4, 0:FEATURE_DIM] + bias_ref[4:5, 0:FEATURE_DIM])

    # ---- entropy bottleneck (eval): quantize + factorized likelihoods ---------
    # TODO(synk): compressai EntropyBottleneck internals (learned factorized CDF,
    # median offsets) are not available in the reference source; simplified.
    q = jnp.round(feat)
    lik = jnp.maximum(jax.nn.sigmoid(q + 0.5) - jax.nn.sigmoid(q - 0.5),
                      LIKELIHOOD_BOUND)

    # ---- Q1/Q2 lane-stacked heads (cols 0:32 = Q1 hidden, 32:64 = Q2 hidden) ---
    h = (jnp.dot(q.astype(bf16), wq_ref[0:16, :], preferred_element_type=f32)
         + jnp.dot(act_ref[...], wq_ref[16:24, :], preferred_element_type=f32)
         + bias_ref[5:6, 0:2 * HIDDEN_DIM])
    h = jnp.maximum(h, 0.0)
    h = jnp.dot(h.astype(bf16), wq_ref[32:96, :],
                preferred_element_type=f32) + bias_ref[6:7, 0:2 * HIDDEN_DIM]
    h = jnp.maximum(h, 0.0)
    qq = (jnp.dot(h.astype(bf16), wq_ref[96:160, :],
                  preferred_element_type=f32)[:, 0:2] + bias_ref[7:8, 0:2])

    # ---- single packed output (one writeback DMA) ------------------------------
    out_ref[:, 0:FEATURE_DIM] = lik
    out_ref[:, FEATURE_DIM:FEATURE_DIM + 2] = qq
    out_ref[:, FEATURE_DIM + 2:OUT_W] = jnp.zeros(
        (BATCH, OUT_W - FEATURE_DIM - 2), f32)


# ----------------------------- wrapper + JAX glue ------------------------------
def critic_forward(params, obs, action):
    """Returns (q1, q2, obs_likelihoods)."""
    B = obs.shape[0]
    # conv1 im2col hoisted out of the kernel: rows = (oh1, b), per-tap stride 32
    xt = obs.transpose(0, 2, 3, 1)                                    # (B, H, W, C)
    rc = 2 * jnp.arange(OH1)[:, None] + jnp.arange(3)[None, :]        # (7, 3)
    p = xt[:, rc][:, :, :, rc]                                        # (b,oh,kh,ow,kw,c)
    p = p.transpose(0, 1, 2, 4, 3, 5).reshape(B, OH1, 9, OH1 * OBS_C)
    p = jnp.pad(p, ((0, 0), (0, 0), (0, 0), (0, TAP1 - OH1 * OBS_C)))
    p = p.transpose(1, 0, 2, 3).reshape(OH1 * B, 9 * TAP1)            # (14, 288)
    p1 = jnp.pad(p, ((0, R1 - OH1 * B), (0, 0))).astype(jnp.bfloat16)

    act = jnp.pad(action, ((0, 0), (0, ACTION_PAD - ACTION_DIM))).astype(jnp.bfloat16)

    out = pl.pallas_call(
        _critic_fused_kernel,
        out_shape=jax.ShapeDtypeStruct((B, OUT_W), jnp.float32),
        in_specs=[_VMEM] * 6,
        out_specs=_VMEM,
        scratch_shapes=[pltpu.VMEM((R1, CW), jnp.float32),   # staged conv1 output
                        pltpu.VMEM((R1, CW), jnp.float32)],  # staged conv2 output
    )(p1, act, params["wenc"], params["wfc"], params["wq"], params["bias"])

    return (out[:, FEATURE_DIM:FEATURE_DIM + 1],
            out[:, FEATURE_DIM + 1:FEATURE_DIM + 2],
            out[:, 0:FEATURE_DIM])


# ----------------------------- deterministic init ------------------------------
def _orthogonal(key, rows, cols, gain=1.0):
    a = jax.random.normal(key, (max(rows, cols), min(rows, cols)), jnp.float32)
    q, r = jnp.linalg.qr(a)
    q = q * jnp.where(jnp.diagonal(r) >= 0.0, 1.0, -1.0)
    if rows < cols:
        q = q.T
    return (gain * q).astype(jnp.float32)


def init_params(key):
    keys = jax.random.split(key, 12)
    ki = iter(keys)
    relu_gain = math.sqrt(2.0)

    # --- pixel-encoder convs (weight_init: zero weights, orthogonal*gain center)
    conv_ws = []
    c_in = OBS_C
    for _ in range(NUM_LAYERS):
        w = jnp.zeros((NUM_FILTERS, c_in, 3, 3), jnp.float32)
        w = w.at[:, :, 1, 1].set(_orthogonal(next(ki), NUM_FILTERS, c_in, relu_gain))
        conv_ws.append(w)
        c_in = NUM_FILTERS
    conv_b = [jnp.zeros((NUM_FILTERS,), jnp.float32) for _ in range(2)]

    # conv1 block weight: per-tap kron(I_OH1, w_tap^T), lane-padded to (32, 64)
    eye1 = jnp.eye(OH1, dtype=jnp.float32)
    blks = []
    for kh in range(3):
        for kw in range(3):
            blk = jnp.kron(eye1, conv_ws[0][:, :, kh, kw].T)           # (28, 56)
            blks.append(jnp.pad(blk, ((0, TAP1 - blk.shape[0]),
                                      (0, CW - blk.shape[1]))))
    w1_mat = jnp.concatenate(blks, axis=0)                             # (288, 64)

    # conv2 banded tap weights: kw shifts absorbed into banded block matrices
    band = []
    for kh in range(3):
        m = jnp.zeros((OH1 * NUM_FILTERS, OH2 * NUM_FILTERS), jnp.float32)   # (56, 40)
        for kw in range(3):
            wt = conv_ws[1][:, :, kh, kw].T                            # (ci, co)
            for ow in range(OH2):
                iw = ow + kw
                m = m.at[iw * NUM_FILTERS:(iw + 1) * NUM_FILTERS,
                         ow * NUM_FILTERS:(ow + 1) * NUM_FILTERS].set(wt)
        band.append(jnp.pad(m, ((0, CW - m.shape[0]), (0, CW - m.shape[1]))))
    w2_mat = jnp.concatenate(band, axis=0)                             # (192, 64)

    wenc = jnp.concatenate([w1_mat, w2_mat], axis=0).astype(jnp.bfloat16)  # (480, 64)

    # fc weight: PyTorch flatten order (co, oh, ow) permuted + split per output row
    fcw = _orthogonal(next(ki), FEATURE_DIM, FLAT_DIM)                 # (16, 200)
    fc3 = fcw.reshape(FEATURE_DIM, NUM_FILTERS, OH2, OH2).transpose(2, 3, 1, 0)
    fc3 = fc3.reshape(OH2, OH2 * NUM_FILTERS, FEATURE_DIM)
    fc3 = jnp.pad(fc3, ((0, 0), (0, CW - OH2 * NUM_FILTERS), (0, 0)))
    wfc = fc3.reshape(OH2 * CW, FEATURE_DIM).astype(jnp.bfloat16)      # (320, 16)

    # Q heads: orthogonal linears, Q1|Q2 lane-stacked, one aligned slab
    def q_linears():
        in_dim = FEATURE_DIM + ACTION_DIM
        w1 = _orthogonal(next(ki), HIDDEN_DIM, in_dim).T               # (22, 32)
        w2 = _orthogonal(next(ki), HIDDEN_DIM, HIDDEN_DIM).T           # (32, 32)
        w3 = _orthogonal(next(ki), 1, HIDDEN_DIM).T                    # (32, 1)
        return w1, w2, w3

    q1w1, q1w2, q1w3 = q_linears()
    q2w1, q2w2, q2w3 = q_linears()
    w1q = jnp.concatenate([q1w1, q2w1], axis=1)                        # (22, 64)

    wq = jnp.zeros((160, CW), jnp.float32)
    wq = wq.at[0:FEATURE_DIM, :].set(w1q[:FEATURE_DIM])                # feat part
    wq = wq.at[16:16 + ACTION_DIM, :].set(w1q[FEATURE_DIM:])           # action part
    wq = wq.at[32:32 + HIDDEN_DIM, 0:HIDDEN_DIM].set(q1w2)             # block-diag L2
    wq = wq.at[32 + HIDDEN_DIM:96, HIDDEN_DIM:].set(q2w2)
    wq = wq.at[96:96 + HIDDEN_DIM, 0].set(q1w3[:, 0])                  # L3 -> col 0 / 1
    wq = wq.at[96 + HIDDEN_DIM:160, 1].set(q2w3[:, 0])
    wq = wq.astype(jnp.bfloat16)

    # all 1-row bias / LayerNorm params packed into one (8,128) f32 slab (one DMA)
    bias = jnp.zeros((8, 128), jnp.float32)
    bias = bias.at[0, 0:OH1 * NUM_FILTERS].set(jnp.tile(conv_b[0], OH1))   # conv1 b
    bias = bias.at[1, 0:OH2 * NUM_FILTERS].set(jnp.tile(conv_b[1], OH2))   # conv2 b
    # row 2: fc bias (zeros); rows 5-7: Q-head biases (zeros)
    bias = bias.at[3, 0:FEATURE_DIM].set(1.0)                              # LN gamma
    # row 4: LN beta (zeros)

    return {"wenc": wenc, "wfc": wfc, "wq": wq, "bias": bias}


# ----------------------------- main --------------------------------------------
if __name__ == "__main__":
    key = jax.random.PRNGKey(0)
    k_param, k_obs, k_act = jax.random.split(key, 3)

    params = init_params(k_param)
    obs = jax.random.normal(k_obs, (BATCH, OBS_C, OBS_H, OBS_W), jnp.float32)
    action = jax.random.normal(k_act, (BATCH, ACTION_DIM), jnp.float32)

    q1, q2, liks = jax.jit(critic_forward)(params, obs, action)
    jax.block_until_ready((q1, q2, liks))

    assert q1.shape == (BATCH, 1) and q2.shape == (BATCH, 1)
    assert liks.shape == (BATCH, FEATURE_DIM)
    assert bool(jnp.all(jnp.isfinite(q1))) and bool(jnp.all(jnp.isfinite(q2)))
    assert bool(jnp.all(liks > 0.0)) and bool(jnp.all(liks <= 1.0))
    print("KERNEL_OK")
</pallas_src>

<mosaic_0001>
module attributes {stable_mosaic.version = 11 : i64} {
  func.func @_critic_fused_kernel(%arg0: memref<16x288xbf16, #tpu.memory_space<vmem>>, %arg1: memref<2x8xbf16, #tpu.memory_space<vmem>>, %arg2: memref<480x64xbf16, #tpu.memory_space<vmem>>, %arg3: memref<320x16xbf16, #tpu.memory_space<vmem>>, %arg4: memref<160x64xbf16, #tpu.memory_space<vmem>>, %arg5: memref<8x128xf32, #tpu.memory_space<vmem>>, %arg6: memref<2x32xf32, #tpu.memory_space<vmem>>, %arg7: memref<16x64xf32, #tpu.memory_space<vmem>>, %arg8: memref<16x64xf32, #tpu.memory_space<vmem>>) attributes {dimension_semantics = [], scalar_prefetch = 0 : i64, scratch_operands = 2 : i64, tpu.core_type = #tpu.core_type<tc>} {
    %c0 = arith.constant 0 : index
    %c0_0 = arith.constant 0 : index
    %0 = vector.load %arg0[%c0, %c0_0] : memref<16x288xbf16, #tpu.memory_space<vmem>>, vector<16x288xbf16>
    %c0_1 = arith.constant 0 : index
    %c0_2 = arith.constant 0 : index
    %1 = vector.load %arg2[%c0_1, %c0_2] : memref<480x64xbf16, #tpu.memory_space<vmem>>, vector<288x64xbf16>
    %cst = arith.constant dense<0.000000e+00> : vector<16x64xf32>
    %2 = tpu.matmul %0, %1, %cst {dimension_numbers = #tpu.dot_dimension_numbers<[1], [0], [0], [1], [0, 0, 1, 1], [], []>} : vector<16x288xbf16>, vector<288x64xbf16>, vector<16x64xf32> -> vector<16x64xf32>
    %c0_3 = arith.constant 0 : index
    %c0_4 = arith.constant 0 : index
    %3 = vector.load %arg5[%c0_3, %c0_4] : memref<8x128xf32, #tpu.memory_space<vmem>>, vector<1x64xf32>
    %4 = vector.broadcast %3 : vector<1x64xf32> to vector<16x64xf32>
    %5 = arith.addf %2, %4 : vector<16x64xf32>
    %cst_5 = arith.constant 0.000000e+00 : f32
    %6 = vector.broadcast %cst_5 : f32 to vector<16x64xf32>
    %7 = arith.maximumf %5, %6 : vector<16x64xf32>
    %c0_6 = arith.constant 0 : index
    %c0_7 = arith.constant 0 : index
    %8 = vector.load %arg7[%c0_6, %c0_7] : memref<16x64xf32, #tpu.memory_space<vmem>>, vector<16x64xf32>
    tpu.vector_store %arg7[%c0_6, %c0_7], %7 {strides = array<i32>} : memref<16x64xf32, #tpu.memory_space<vmem>>, vector<16x64xf32>,
    %cst_8 = arith.constant 0.000000e+00 : f32
    %9 = vector.broadcast %cst_8 : f32 to vector<10x64xf32>
    %c1 = arith.constant 1 : index
    %c0_9 = arith.constant 0 : index
    %10 = vector.load %arg5[%c1, %c0_9] : memref<8x128xf32, #tpu.memory_space<vmem>>, vector<1x64xf32>
    %11 = vector.broadcast %10 : vector<1x64xf32> to vector<10x64xf32>
    %12 = arith.addf %9, %11 : vector<10x64xf32>
    %c0_10 = arith.constant 0 : index
    %c0_11 = arith.constant 0 : index
    %13 = vector.load %arg7[%c0_10, %c0_11] : memref<16x64xf32, #tpu.memory_space<vmem>>, vector<10x64xf32>
    %14 = arith.truncf %13 : vector<10x64xf32> to vector<10x64xbf16>
    %c288 = arith.constant 288 : index
    %c0_12 = arith.constant 0 : index
    %15 = vector.load %arg2[%c288, %c0_12] : memref<480x64xbf16, #tpu.memory_space<vmem>>, vector<64x64xbf16>
    %cst_13 = arith.constant dense<0.000000e+00> : vector<10x64xf32>
    %16 = tpu.matmul %14, %15, %cst_13 {dimension_numbers = #tpu.dot_dimension_numbers<[1], [0], [0], [1], [0, 0, 1, 1], [], []>} : vector<10x64xbf16>, vector<64x64xbf16>, vector<10x64xf32> -> vector<10x64xf32>
    %17 = arith.addf %12, %16 : vector<10x64xf32>
    %c2 = arith.constant 2 : index
    %c0_14 = arith.constant 0 : index
    %18 = vector.load %arg7[%c2, %c0_14] : memref<16x64xf32, #tpu.memory_space<vmem>>, vector<10x64xf32>
    %19 = arith.truncf %18 : vector<10x64xf32> to vector<10x64xbf16>
    %c352 = arith.constant 352 : index
    %c0_15 = arith.constant 0 : index
    %20 = vector.load %arg2[%c352, %c0_15] : memref<480x64xbf16, #tpu.memory_space<vmem>>, vector<64x64xbf16>
    %cst_16 = arith.constant dense<0.000000e+00> : vector<10x64xf32>
    %21 = tpu.matmul %19, %20, %cst_16 {dimension_numbers = #tpu.dot_dimension_numbers<[1], [0], [0], [1], [0, 0, 1, 1], [], []>} : vector<10x64xbf16>, vector<64x64xbf16>, vector<10x64xf32> -> vector<10x64xf32>
    %22 = arith.addf %17, %21 : vector<10x64xf32>
    %c4 = arith.constant 4 : index
    %c0_17 = arith.constant 0 : index
    %23 = vector.load %arg7[%c4, %c0_17] : memref<16x64xf32, #tpu.memory_space<vmem>>, vector<10x64xf32>
    %24 = arith.truncf %23 : vector<10x64xf32> to vector<10x64xbf16>
    %c416 = arith.constant 416 : index
    %c0_18 = arith.constant 0 : index
    %25 = vector.load %arg2[%c416, %c0_18] : memref<480x64xbf16, #tpu.memory_space<vmem>>, vector<64x64xbf16>
    %cst_19 = arith.constant dense<0.000000e+00> : vector<10x64xf32>
    %26 = tpu.matmul %24, %25, %cst_19 {dimension_numbers = #tpu.dot_dimension_numbers<[1], [0], [0], [1], [0, 0, 1, 1], [], []>} : vector<10x64xbf16>, vector<64x64xbf16>, vector<10x64xf32> -> vector<10x64xf32>
    %27 = arith.addf %22, %26 : vector<10x64xf32>
    %cst_20 = arith.constant 0.000000e+00 : f32
    %28 = vector.broadcast %cst_20 : f32 to vector<10x64xf32>
    %29 = arith.maximumf %27, %28 : vector<10x64xf32>
    %c0_21 = arith.constant 0 : index
    %c0_22 = arith.constant 0 : index
    %30 = vector.load %arg8[%c0_21, %c0_22] : memref<16x64xf32, #tpu.memory_space<vmem>>, vector<10x64xf32>
    tpu.vector_store %arg8[%c0_21, %c0_22], %29 {strides = array<i32>} : memref<16x64xf32, #tpu.memory_space<vmem>>, vector<10x64xf32>,
    %cst_23 = arith.constant 0.000000e+00 : f32
    %31 = vector.broadcast %cst_23 : f32 to vector<2x16xf32>
    %c2_24 = arith.constant 2 : index
    %c0_25 = arith.constant 0 : index
    %32 = vector.load %arg5[%c2_24, %c0_25] : memref<8x128xf32, #tpu.memory_space<vmem>>, vector<1x16xf32>
    %33 = vector.broadcast %32 : vector<1x16xf32> to vector<2x16xf32>
    %34 = arith.addf %31, %33 : vector<2x16xf32>
    %c0_26 = arith.constant 0 : index
    %c0_27 = arith.constant 0 : index
    %35 = vector.load %arg8[%c0_26, %c0_27] : memref<16x64xf32, #tpu.memory_space<vmem>>, vector<2x64xf32>
    %36 = arith.truncf %35 : vector<2x64xf32> to vector<2x64xbf16>
    %c0_28 = arith.constant 0 : index
    %c0_29 = arith.constant 0 : index
    %37 = vector.load %arg3[%c0_28, %c0_29] : memref<320x16xbf16, #tpu.memory_space<vmem>>, vector<64x16xbf16>
    %cst_30 = arith.constant dense<0.000000e+00> : vector<2x16xf32>
    %38 = tpu.matmul %36, %37, %cst_30 {dimension_numbers = #tpu.dot_dimension_numbers<[1], [0], [0], [1], [0, 0, 1, 1], [], []>} : vector<2x64xbf16>, vector<64x16xbf16>, vector<2x16xf32> -> vector<2x16xf32>
    %39 = arith.addf %34, %38 : vector<2x16xf32>
    %c2_31 = arith.constant 2 : index
    %c0_32 = arith.constant 0 : index
    %40 = vector.load %arg8[%c2_31, %c0_32] : memref<16x64xf32, #tpu.memory_space<vmem>>, vector<2x64xf32>
    %41 = arith.truncf %40 : vector<2x64xf32> to vector<2x64xbf16>
    %c64 = arith.constant 64 : index
    %c0_33 = arith.constant 0 : index
    %42 = vector.load %arg3[%c64, %c0_33] : memref<320x16xbf16, #tpu.memory_space<vmem>>, vector<64x16xbf16>
    %cst_34 = arith.constant dense<0.000000e+00> : vector<2x16xf32>
    %43 = tpu.matmul %41, %42, %cst_34 {dimension_numbers = #tpu.dot_dimension_numbers<[1], [0], [0], [1], [0, 0, 1, 1], [], []>} : vector<2x64xbf16>, vector<64x16xbf16>, vector<2x16xf32> -> vector<2x16xf32>
    %44 = arith.addf %39, %43 : vector<2x16xf32>
    %c4_35 = arith.constant 4 : index
    %c0_36 = arith.constant 0 : index
    %45 = vector.load %arg8[%c4_35, %c0_36] : memref<16x64xf32, #tpu.memory_space<vmem>>, vector<2x64xf32>
    %46 = arith.truncf %45 : vector<2x64xf32> to vector<2x64xbf16>
    %c128 = arith.constant 128 : index
    %c0_37 = arith.constant 0 : index
    %47 = vector.load %arg3[%c128, %c0_37] : memref<320x16xbf16, #tpu.memory_space<vmem>>, vector<64x16xbf16>
    %cst_38 = arith.constant dense<0.000000e+00> : vector<2x16xf32>
    %48 = tpu.matmul %46, %47, %cst_38 {dimension_numbers = #tpu.dot_dimension_numbers<[1], [0], [0], [1], [0, 0, 1, 1], [], []>} : vector<2x64xbf16>, vector<64x16xbf16>, vector<2x16xf32> -> vector<2x16xf32>
    %49 = arith.addf %44, %48 : vector<2x16xf32>
    %c6 = arith.constant 6 : index
    %c0_39 = arith.constant 0 : index
    %50 = vector.load %arg8[%c6, %c0_39] : memref<16x64xf32, #tpu.memory_space<vmem>>, vector<2x64xf32>
    %51 = arith.truncf %50 : vector<2x64xf32> to vector<2x64xbf16>
    %c192 = arith.constant 192 : index
    %c0_40 = arith.constant 0 : index
    %52 = vector.load %arg3[%c192, %c0_40] : memref<320x16xbf16, #tpu.memory_space<vmem>>, vector<64x16xbf16>
    %cst_41 = arith.constant dense<0.000000e+00> : vector<2x16xf32>
    %53 = tpu.matmul %51, %52, %cst_41 {dimension_numbers = #tpu.dot_dimension_numbers<[1], [0], [0], [1], [0, 0, 1, 1], [], []>} : vector<2x64xbf16>, vector<64x16xbf16>, vector<2x16xf32> -> vector<2x16xf32>
    %54 = arith.addf %49, %53 : vector<2x16xf32>
    %c8 = arith.constant 8 : index
    %c0_42 = arith.constant 0 : index
    %55 = vector.load %arg8[%c8, %c0_42] : memref<16x64xf32, #tpu.memory_space<vmem>>, vector<2x64xf32>
    %56 = arith.truncf %55 : vector<2x64xf32> to vector<2x64xbf16>
    %c256 = arith.constant 256 : index
    %c0_43 = arith.constant 0 : index
    %57 = vector.load %arg3[%c256, %c0_43] : memref<320x16xbf16, #tpu.memory_space<vmem>>, vector<64x16xbf16>
    %cst_44 = arith.constant dense<0.000000e+00> : vector<2x16xf32>
    %58 = tpu.matmul %56, %57, %cst_44 {dimension_numbers = #tpu.dot_dimension_numbers<[1], [0], [0], [1], [0, 0, 1, 1], [], []>} : vector<2x64xbf16>, vector<64x16xbf16>, vector<2x16xf32> -> vector<2x16xf32>
    %59 = arith.addf %54, %58 : vector<2x16xf32>
    %cst_45 = arith.constant dense<0.000000e+00> : vector<2xf32>
    %60 = vector.multi_reduction <add>, %59, %cst_45 [1] : vector<2x16xf32> to vector<2xf32>
    %61 = vector.shape_cast %60 : vector<2xf32> to vector<2x1xf32>
    %cst_46 = arith.constant 1.600000e+01 : f32
    %62 = vector.broadcast %cst_46 : f32 to vector<2x1xf32>
    %63 = arith.divf %61, %62 : vector<2x1xf32>
    %64 = vector.broadcast %63 : vector<2x1xf32> to vector<2x16xf32>
    %65 = arith.subf %59, %64 : vector<2x16xf32>
    %66 = arith.mulf %65, %65 : vector<2x16xf32>
    %cst_47 = arith.constant dense<0.000000e+00> : vector<2xf32>
    %67 = vector.multi_reduction <add>, %66, %cst_47 [1] : vector<2x16xf32> to vector<2xf32>
    %68 = vector.shape_cast %67 : vector<2xf32> to vector<2x1xf32>
    %cst_48 = arith.constant 1.600000e+01 : f32
    %69 = vector.broadcast %cst_48 : f32 to vector<2x1xf32>
    %70 = arith.divf %68, %69 : vector<2x1xf32>
    %71 = vector.broadcast %63 : vector<2x1xf32> to vector<2x16xf32>
    %72 = arith.subf %59, %71 : vector<2x16xf32>
    %cst_49 = arith.constant 9.99999974E-6 : f32
    %73 = vector.broadcast %cst_49 : f32 to vector<2x1xf32>
    %74 = arith.addf %70, %73 : vector<2x1xf32>
    %75 = math.rsqrt %74 : vector<2x1xf32>
    %76 = vector.broadcast %75 : vector<2x1xf32> to vector<2x16xf32>
    %77 = arith.mulf %72, %76 : vector<2x16xf32>
    %c3 = arith.constant 3 : index
    %c0_50 = arith.constant 0 : index
    %78 = vector.load %arg5[%c3, %c0_50] : memref<8x128xf32, #tpu.memory_space<vmem>>, vector<1x16xf32>
    %79 = vector.broadcast %78 : vector<1x16xf32> to vector<2x16xf32>
    %80 = arith.mulf %77, %79 : vector<2x16xf32>
    %c4_51 = arith.constant 4 : index
    %c0_52 = arith.constant 0 : index
    %81 = vector.load %arg5[%c4_51, %c0_52] : memref<8x128xf32, #tpu.memory_space<vmem>>, vector<1x16xf32>
    %82 = vector.broadcast %81 : vector<1x16xf32> to vector<2x16xf32>
    %83 = arith.addf %80, %82 : vector<2x16xf32>
    %84 = math.tanh %83 : vector<2x16xf32>
    %85 = math.roundeven %84 : vector<2x16xf32>
    %cst_53 = arith.constant 5.000000e-01 : f32
    %86 = vector.broadcast %cst_53 : f32 to vector<2x16xf32>
    %87 = arith.addf %85, %86 : vector<2x16xf32>
    %88 = arith.negf %87 : vector<2x16xf32>
    %89 = math.exp %88 : vector<2x16xf32>
    %cst_54 = arith.constant 1.000000e+00 : f32
    %90 = vector.broadcast %cst_54 : f32 to vector<2x16xf32>
    %91 = arith.addf %90, %89 : vector<2x16xf32>
    %92 = arith.divf %90, %91 : vector<2x16xf32>
    %cst_55 = arith.constant 5.000000e-01 : f32
    %93 = vector.broadcast %cst_55 : f32 to vector<2x16xf32>
    %94 = arith.subf %85, %93 : vector<2x16xf32>
    %95 = arith.negf %94 : vector<2x16xf32>
    %96 = math.exp %95 : vector<2x16xf32>
    %cst_56 = arith.constant 1.000000e+00 : f32
    %97 = vector.broadcast %cst_56 : f32 to vector<2x16xf32>
    %98 = arith.addf %97, %96 : vector<2x16xf32>
    %99 = arith.divf %97, %98 : vector<2x16xf32>
    %100 = arith.subf %92, %99 : vector<2x16xf32>
    %cst_57 = arith.constant 9.99999971E-10 : f32
    %101 = vector.broadcast %cst_57 : f32 to vector<2x16xf32>
    %102 = arith.maximumf %100, %101 : vector<2x16xf32>
    %103 = arith.truncf %85 : vector<2x16xf32> to vector<2x16xbf16>
    %c0_58 = arith.constant 0 : index
    %c0_59 = arith.constant 0 : index
    %104 = vector.load %arg4[%c0_58, %c0_59] : memref<160x64xbf16, #tpu.memory_space<vmem>>, vector<16x64xbf16>
    %cst_60 = arith.constant dense<0.000000e+00> : vector<2x64xf32>
    %105 = tpu.matmul %103, %104, %cst_60 {dimension_numbers = #tpu.dot_dimension_numbers<[1], [0], [0], [1], [0, 0, 1, 1], [], []>} : vector<2x16xbf16>, vector<16x64xbf16>, vector<2x64xf32> -> vector<2x64xf32>
    %c0_61 = arith.constant 0 : index
    %c0_62 = arith.constant 0 : index
    %106 = vector.load %arg1[%c0_61, %c0_62] : memref<2x8xbf16, #tpu.memory_space<vmem>>, vector<2x8xbf16>
    %c16 = arith.constant 16 : index
    %c0_63 = arith.constant 0 : index
    %107 = vector.load %arg4[%c16, %c0_63] : memref<160x64xbf16, #tpu.memory_space<vmem>>, vector<8x64xbf16>
    %cst_64 = arith.constant dense<0.000000e+00> : vector<2x64xf32>
    %108 = tpu.matmul %106, %107, %cst_64 {dimension_numbers = #tpu.dot_dimension_numbers<[1], [0], [0], [1], [0, 0, 1, 1], [], []>} : vector<2x8xbf16>, vector<8x64xbf16>, vector<2x64xf32> -> vector<2x64xf32>
    %109 = arith.addf %105, %108 : vector<2x64xf32>
    %c5 = arith.constant 5 : index
    %c0_65 = arith.constant 0 : index
    %110 = vector.load %arg5[%c5, %c0_65] : memref<8x128xf32, #tpu.memory_space<vmem>>, vector<1x64xf32>
    %111 = vector.broadcast %110 : vector<1x64xf32> to vector<2x64xf32>
    %112 = arith.addf %109, %111 : vector<2x64xf32>
    %cst_66 = arith.constant 0.000000e+00 : f32
    %113 = vector.broadcast %cst_66 : f32 to vector<2x64xf32>
    %114 = arith.maximumf %112, %113 : vector<2x64xf32>
    %115 = arith.truncf %114 : vector<2x64xf32> to vector<2x64xbf16>
    %c32 = arith.constant 32 : index
    %c0_67 = arith.constant 0 : index
    %116 = vector.load %arg4[%c32, %c0_67] : memref<160x64xbf16, #tpu.memory_space<vmem>>, vector<64x64xbf16>
    %cst_68 = arith.constant dense<0.000000e+00> : vector<2x64xf32>
    %117 = tpu.matmul %115, %116, %cst_68 {dimension_numbers = #tpu.dot_dimension_numbers<[1], [0], [0], [1], [0, 0, 1, 1], [], []>} : vector<2x64xbf16>, vector<64x64xbf16>, vector<2x64xf32> -> vector<2x64xf32>
    %c6_69 = arith.constant 6 : index
    %c0_70 = arith.constant 0 : index
    %118 = vector.load %arg5[%c6_69, %c0_70] : memref<8x128xf32, #tpu.memory_space<vmem>>, vector<1x64xf32>
    %119 = vector.broadcast %118 : vector<1x64xf32> to vector<2x64xf32>
    %120 = arith.addf %117, %119 : vector<2x64xf32>
    %cst_71 = arith.constant 0.000000e+00 : f32
    %121 = vector.broadcast %cst_71 : f32 to vector<2x64xf32>
    %122 = arith.maximumf %120, %121 : vector<2x64xf32>
    %123 = arith.truncf %122 : vector<2x64xf32> to vector<2x64xbf16>
    %c96 = arith.constant 96 : index
    %c0_72 = arith.constant 0 : index
    %124 = vector.load %arg4[%c96, %c0_72] : memref<160x64xbf16, #tpu.memory_space<vmem>>, vector<64x64xbf16>
    %cst_73 = arith.constant dense<0.000000e+00> : vector<2x64xf32>
    %125 = tpu.matmul %123, %124, %cst_73 {dimension_numbers = #tpu.dot_dimension_numbers<[1], [0], [0], [1], [0, 0, 1, 1], [], []>} : vector<2x64xbf16>, vector<64x64xbf16>, vector<2x64xf32> -> vector<2x64xf32>
    %126 = vector.extract_strided_slice %125 {offsets = [0, 0], sizes = [2, 2], strides = [1, 1]} : vector<2x64xf32> to vector<2x2xf32>
    %c7 = arith.constant 7 : index
    %c0_74 = arith.constant 0 : index
    %127 = vector.load %arg5[%c7, %c0_74] : memref<8x128xf32, #tpu.memory_space<vmem>>, vector<1x2xf32>
    %128 = vector.broadcast %127 : vector<1x2xf32> to vector<2x2xf32>
    %129 = arith.addf %126, %128 : vector<2x2xf32>
    %c0_75 = arith.constant 0 : index
    %c0_76 = arith.constant 0 : index
    %130 = vector.load %arg6[%c0_75, %c0_76] : memref<2x32xf32, #tpu.memory_space<vmem>>, vector<2x16xf32>
    tpu.vector_store %arg6[%c0_75, %c0_76], %102 {strides = array<i32>} : memref<2x32xf32, #tpu.memory_space<vmem>>, vector<2x16xf32>,
    %c0_77 = arith.constant 0 : index
    %c16_78 = arith.constant 16 : index
    %131 = vector.load %arg6[%c0_77, %c16_78] : memref<2x32xf32, #tpu.memory_space<vmem>>, vector<2x2xf32>
    tpu.vector_store %arg6[%c0_77, %c16_78], %129 {strides = array<i32>} : memref<2x32xf32, #tpu.memory_space<vmem>>, vector<2x2xf32>,
    %cst_79 = arith.constant 0.000000e+00 : f32
    %132 = vector.broadcast %cst_79 : f32 to vector<2x14xf32>
    %c0_80 = arith.constant 0 : index
    %c18 = arith.constant 18 : index
    %133 = vector.load %arg6[%c0_80, %c18] : memref<2x32xf32, #tpu.memory_space<vmem>>, vector<2x14xf32>
    tpu.vector_store %arg6[%c0_80, %c18], %132 {strides = array<i32>} : memref<2x32xf32, #tpu.memory_space<vmem>>, vector<2x14xf32>,
    return
  }
}

</mosaic_0001>

<bundles_post_ra>
// kernel: critic_forward.1
= control target key start
LH: loop header
LB: loop body
LE: loop exit
PB: predicated region body
PF: predicated region fallthrough
CT: control target
= control target key end

     0   :  { %vm189_vm0 = vcmask 261120   ;;  %vm237_vm1 = vcmask 523264   ;;  %vm408_vm2 = vcmask 517120   ;;  %vm668_vm3 = vcmask 123904   ;;  %s1278_s19 = smov 16   ;;  %s1565_s2 = inlined_call_operand.vmem [shape: bf16[480,64], index: 2, kind: input, shape index: {}]   ;;  %s1566_s0 = inlined_call_operand.vmem [shape: bf16[16,288], index: 0, kind: input, shape index: {}]   ;;  %s1567_s5 = inlined_call_operand.vmem [shape: f32[8,128], index: 5, kind: input, shape index: {}]   ;;  %s1568_s3 = inlined_call_operand.vmem [shape: bf16[320,16], index: 3, kind: input, shape index: {}]   ;;  %s1569_s4 = inlined_call_operand.vmem [shape: bf16[160,64], index: 4, kind: input, shape index: {}]   ;;  %s1570_s1 = inlined_call_operand.vmem [shape: bf16[2,8], index: 1, kind: input, shape index: {}]   ;;  %s1571_s6 = inlined_call_operand.vmem [shape: f32[2,32], index: 6, kind: output, shape index: {}]  }
   0x1   :  { %v1192_v0 = vld [vmem:[%s1565_s2 + $0x38] sm:$0xff]  ;;  %v1191_v2 = vld [vmem:[%s1565_s2 + $0x30] sm:$0xff]  ;;  %v1202_v4 = vld [vmem:[%s1565_s2 + $0x88] sm:$0xff]  ;;  %vm757_vm5 = vcmask 1043456   ;;  %vm753_vm6 = vcmask 64512   ;;  %vm780_vm11 = vcmask 130048  }
   0x2   :  { %v1200_v1 = vld [vmem:[%s1565_s2 + $0x78] sm:$0xff]  ;;  %193 = vmatpush.bf16.msra.mxu0 %v1192_v0  ;;  %v1199_v3 = vld [vmem:[%s1565_s2 + $0x70] sm:$0xff]  ;;  %227 = vmatpush.bf16.msra.mxu2 %v1202_v4  ;;  %v1201_v5 = vld [vmem:[%s1565_s2 + $0x80] sm:$0xff] }
   0x3   :  { %207 = vmatpush.bf16.msra.mxu1 %v1200_v1  ;;  %v928_v6 = vld [vmem:[%s1566_s0 + $0x8] sm:$0xf]  ;;  %v1184_v7 = vld [vmem:[%s1566_s0 + $0x10] sm:$0xf0]  ;;  %v1189_v11 = vld [vmem:[%s1565_s2 + $0x20] sm:$0xff] }
   0x4   :  { %v1190_v8 = vld [vmem:[%s1565_s2 + $0x28] sm:$0xff]  ;;  %v929_v10 = vor.u32 %v1184_v7, %v928_v6  ;;  %v1197_v12 = vld [vmem:[%s1565_s2 + $0x60] sm:$0xff]  ;;  %v1188_v13 = vld [vmem:[%s1565_s2 + $0x18] sm:$0xff] }
   0x5   :  { %v1198_v9 = vld [vmem:[%s1565_s2 + $0x68] sm:$0xff]  ;;  %v1196_v14 = vld [vmem:[%s1565_s2 + $0x58] sm:$0xff]  ;;  %v1187_v15 = vld [vmem:[%s1565_s2 + $0x10] sm:$0xff] }
   0x6   :  { %194 = vmatpush.bf16.msra.mxu0 %v1191_v2  ;;  %228 = vmatpush.bf16.msra.mxu2 %v1201_v5  ;;  %v1195_v16 = vld [vmem:[%s1565_s2 + $0x50] sm:$0xff]  ;;  %v1186_v17 = vld [vmem:[%s1565_s2 + $0x8] sm:$0xff]  ;;  %v1185_v19 = vld [vmem:[%s1565_s2] sm:$0xff] }
   0x7   :  { %208 = vmatpush.bf16.msra.mxu1 %v1199_v3  ;;  %v1194_v18 = vld [vmem:[%s1565_s2 + $0x48] sm:$0xff]  ;;  %v1193_v20 = vld [vmem:[%s1565_s2 + $0x40] sm:$0xff]  ;;  %v922_v24 = vld [vmem:[%s1566_s0 + $0xc] sm:$0xf0] }
   0x8   :  { %v920_v21 = vld [vmem:[%s1566_s0] sm:$0xf]  ;;  %v1183_v22 = vld [vmem:[%s1566_s0 + $0x8] sm:$0xf0]  ;;  %v1182_v23 = vld [vmem:[%s1566_s0 + $0x4] sm:$0xf] }
   0x9   :  { %1002 = vmatmul.msk.bf16.vlgmr.msra.gmra.mxu2 %vm189_vm0, %v929_v10  ;;  %v921_v25 = vor.u32 %v1183_v22, %v920_v21  ;;  %v925_v26 = vor.u32 %v1182_v23, %v922_v24  ;;  %v1206_v27 = vld [vmem:[%s1565_s2 + $0xa8] sm:$0xff]  ;;  %v1205_v29 = vld [vmem:[%s1565_s2 + $0xa0] sm:$0xff]  ;;  %v1204_v31 = vld [vmem:[%s1565_s2 + $0x98] sm:$0xff] }
   0xa   :  { %195 = vmatpush.bf16.msra.mxu0 %v1190_v8  ;;  %v1210_v28 = vld [vmem:[%s1565_s2 + $0xc8] sm:$0xff]  ;;  %285 = vmatpush.bf16.msra.mxu3 %v1206_v27  ;;  %v1209_v30 = vld [vmem:[%s1565_s2 + $0xc0] sm:$0xff]  ;;  %v1208_v32 = vld [vmem:[%s1565_s2 + $0xb8] sm:$0xff] }
   0xb   :  { %209 = vmatpush.bf16.msra.mxu1 %v1198_v9  ;;  %339 = vmatpush.bf16.msrb.mxu2 %v1210_v28  ;;  %v1203_v33 = vld [vmem:[%s1565_s2 + $0x90] sm:$0xff]  ;;  %v1214_v35 = vld [vmem:[%s1565_s2 + $0xe8] sm:$0xff]  ;;  %v1213_v36 = vld [vmem:[%s1565_s2 + $0xe0] sm:$0xff] }
   0xc   :  { %v1207_v34 = vld [vmem:[%s1565_s2 + $0xb0] sm:$0xff]  ;;  %v1255_v37 = vld [vmem:[%s1567_s5] ss:$0 sm:$0xff]  ;;  %v1212_v40 = vld [vmem:[%s1565_s2 + $0xd8] sm:$0xff] }
   0xd   :  { %v1211_v44 = vld [vmem:[%s1565_s2 + $0xd0] sm:$0xff]  ;;  %v1218_v63 = vld [vmem:[%s1568_s3 + $0x18] sm:$0xff]  ;;  %v1216_v7 = vld [vmem:[%s1568_s3 + $0x8] sm:$0xff] }
   0xe   :  { %196 = vmatpush.bf16.msra.mxu0 %v1189_v11  ;;  %286 = vmatpush.bf16.msra.mxu3 %v1205_v29  ;;  %v1222_v0 = vld [vmem:[%s1568_s3 + $0x38] sm:$0xff]  ;;  %v1217_v3 = vld [vmem:[%s1568_s3 + $0x10] sm:$0xff]  ;;  %v1220_v8 = vld [vmem:[%s1568_s3 + $0x28] sm:$0xff] }
   0xf   :  { %210 = vmatpush.bf16.msra.mxu1 %v1197_v12  ;;  %340 = vmatpush.bf16.msrb.mxu2 %v1209_v30  ;;  %v1226_v1 = vld [vmem:[%s1568_s3 + $0x58] sm:$0xff]  ;;  %v1221_v4 = vld [vmem:[%s1568_s3 + $0x30] sm:$0xff]  ;;  %v1224_v9 = vld [vmem:[%s1568_s3 + $0x48] sm:$0xff] }
  0x10   :  { %v1230_v2 = vld [vmem:[%s1568_s3 + $0x78] sm:$0xff]  ;;  %v1225_v5 = vld [vmem:[%s1568_s3 + $0x50] sm:$0xff]  ;;  %v1228_v10 = vld [vmem:[%s1568_s3 + $0x68] sm:$0xff] }
  0x11   :  { %v1229_v6 = vld [vmem:[%s1568_s3 + $0x70] sm:$0xff]  ;;  %v1215_v11 = vld [vmem:[%s1568_s3] sm:$0xff] }
  0x12   :  { %197 = vmatpush.bf16.msra.mxu0 %v1188_v13  ;;  %287 = vmatpush.bf16.msra.mxu3 %v1204_v31  ;;  %v1219_v12 = vld [vmem:[%s1568_s3 + $0x20] sm:$0xff] }
  0x13   :  { %211 = vmatpush.bf16.msra.mxu1 %v1196_v14  ;;  %341 = vmatpush.bf16.msrb.mxu2 %v1208_v32  ;;  %v1223_v13 = vld [vmem:[%s1568_s3 + $0x40] sm:$0xff] }
  0x14   :  { %v1227_v14 = vld [vmem:[%s1568_s3 + $0x60] sm:$0xff] }
  0x15   :  { %v1231_v21 = vld [vmem:[%s1568_s3 + $0x80] sm:$0xff] }
  0x16   :  { %198 = vmatpush.bf16.msra.mxu0 %v1187_v15  ;;  %288 = vmatpush.bf16.msra.mxu3 %v1203_v33  ;;  %v1234_v15 = vld [vmem:[%s1568_s3 + $0x98] sm:$0xff] }
  0x17   :  { %212 = vmatpush.bf16.msra.mxu1 %v1195_v16  ;;  %342 = vmatpush.bf16.msrb.mxu2 %v1207_v34 }
  0x1a   :  { %199 = vmatpush.bf16.msra.mxu0 %v1186_v17  ;;  %393 = vmatpush.bf16.msrb.mxu3 %v1214_v35  ;;  %v1233_v17 = vld [vmem:[%s1568_s3 + $0x90] sm:$0xff] }
  0x1b   :  { %213 = vmatpush.bf16.msra.mxu1 %v1194_v18  ;;  %454 = vmatpush.bf16.msra.mxu2 %v1218_v63  ;;  %v1232_v18 = vld [vmem:[%s1568_s3 + $0x88] sm:$0xff] }
  0x1e   :  { %200 = vmatpush.bf16.msra.mxu0 %v1185_v19  ;;  %394 = vmatpush.bf16.msrb.mxu3 %v1213_v36  ;;  %v1256_v19 = vld [vmem:[%s1567_s5 + $0x1] ss:$0 sm:$0xff] }
  0x1f   :  { %214 = vmatpush.bf16.msra.mxu1 %v1193_v20  ;;  %455 = vmatpush.bf16.msra.mxu2 %v1217_v3 }
  0x21   :  { %201 = vmatmul.bf16.vlgmr.msra.gmra.mxu0 %v921_v25 }
  0x22   :  { %215 = vmatmul.bf16.vlgmr.msra.gmra.mxu1 %v925_v26  ;;  %395 = vmatpush.bf16.msrb.mxu3 %v1212_v40 }
  0x23   :  { %505 = vmatpush.bf16.msrb.mxu0 %v1222_v0  ;;  %556 = vmatpush.bf16.msrb.mxu1 %v1226_v1 }
  0x24   :  { %456 = vmatpush.bf16.msra.mxu2 %v1216_v7 }
  0x26   :  { %396 = vmatpush.bf16.msrb.mxu3 %v1211_v44 }
  0x27   :  { %506 = vmatpush.bf16.msrb.mxu0 %v1221_v4  ;;  %557 = vmatpush.bf16.msrb.mxu1 %v1225_v5 }
  0x28   :  { %457 = vmatpush.bf16.msra.mxu2 %v1215_v11 }
  0x2b   :  { %507 = vmatpush.bf16.msrb.mxu0 %v1220_v8  ;;  %558 = vmatpush.bf16.msrb.mxu1 %v1224_v9  ;;  %v752_v9 = vld [vmem:[%s1569_s4 + $0x8] sm:$0xf] }
  0x2c   :  { %v759_v11 = vsel %vm757_vm5, %v752_v9, 0  ;;  %v1243_v9 = vld [vmem:[%s1569_s4 + $0x48] sm:$0xff] }
  0x2f   :  { %508 = vmatpush.bf16.msrb.mxu0 %v1219_v12  ;;  %559 = vmatpush.bf16.msrb.mxu1 %v1223_v13  ;;  %v751_v12 = vld [vmem:[%s1570_s1] sm:$0x1] }
  0x33   :  { %768 = vmatpush.bf16.msra.mxu0 %v759_v11  ;;  %v1241_v11 = vld [vmem:[%s1569_s4 + $0x38] sm:$0xff] }
  0x8c   :  { %v230_v42 = vpop.f32.mrf.mxu2 }
  0x94   :  { %v232_v51 = vpop.f32.mrf.mxu2 }
  0x9e   :  { %v202_v38 = vpop.f32.mrf.mxu0 }
  0x9f   :  { %v216_v39 = vpop.f32.mrf.mxu1  ;;  %v203_v41 = vadd.f32 %v1255_v37, %v202_v38 }
  0xa1   :  { %v217_v43 = vadd.f32 %v216_v39, %v203_v41 }
  0xa3   :  { %v231_v45 = vadd.f32 %v230_v42, %v217_v43 }
  0xa5   :  { %v235_v46 = vmax.f32 %v231_v45, 0.0 }
  0xa6   :  { %v204_v47 = vpop.f32.mrf.mxu0 }
  0xa7   :  { %238 = vst.msk [vmem:[#allocation2] sm:$0xff] %vm237_vm1, %v235_v46  ;;  %v205_v48 = vadd.f32 %v1255_v37, %v204_v47  ;;  %v218_v49 = vpop.f32.mrf.mxu1  ;;  %v1257_v46 = vld [vmem:[%s1567_s5 + $0x2] ss:$0 sm:$0xff] }
  0xa9   :  { %v219_v50 = vadd.f32 %v218_v49, %v205_v48 }
  0xab   :  { %v233_v52 = vadd.f32 %v232_v51, %v219_v50 }
  0xad   :  { %v236_v53 = vmax.f32 %v233_v52, 0.0 }
  0xae   :  { %v243_v54 = vld [vmem:[#allocation2] sm:$0xff] }
  0xaf   :  { %239 = vst.msk [vmem:[#allocation2 + $0x8] sm:$0xff] %vm237_vm1, %v236_v53 }
  0xb6   :  { %v244_v55 = vld [vmem:[#allocation2 + $0x8] sm:$0x3]  ;;  %v298_v57 = vld [vmem:[#allocation2 + $0xa] sm:$0x3]  ;;  %v352_v61 = vld [vmem:[#allocation2 + $0xc] sm:$0x3] }
  0xb7   :  { %v297_v56 = vld [vmem:[#allocation2 + $0x2] sm:$0xff]  ;;  %v245_v58 = vpack.c.bf16 %v244_v55, %v243_v54 }
  0xb8   :  { %v299_v59 = vpack.c.bf16 %v298_v57, %v297_v56  ;;  %v351_v60 = vld [vmem:[#allocation2 + $0x4] sm:$0xff] }
  0xb9   :  { %1019 = vmatmul.msk.bf16.vlgmr.msra.gmra.mxu3 %vm237_vm1, %v245_v58  ;;  %v353_v62 = vpack.c.bf16 %v352_v61, %v351_v60  ;;  %v1277_v61 = vmov 16.0  }
  0xba   :  { %1036 = vmatmul.msk.bf16.vlgmr.msrb.gmra.mxu2 %vm237_vm1, %v299_v59  ;;  %607 = vmatpush.bf16.msra.mxu3 %v1230_v2  ;;  %1263 = vrcp.f32 %v1277_v61 }
  0xbb   :  { %658 = vmatpush.bf16.msrb.mxu2 %v1234_v15 }
  0xbe   :  { %608 = vmatpush.bf16.msra.mxu3 %v1229_v6 }
  0xbf   :  { %659 = vmatpush.bf16.msrb.mxu2 %v1233_v17 }
  0xc2   :  { %609 = vmatpush.bf16.msra.mxu3 %v1228_v10  ;;  %v1235_v10 = vld [vmem:[%s1569_s4] sm:$0xff] }
  0xc3   :  { %660 = vmatpush.bf16.msrb.mxu2 %v1232_v18  ;;  %791 = vmatpush.bf16.msra.mxu1 %v1235_v10  ;;  %v1242_v10 = vld [vmem:[%s1569_s4 + $0x40] sm:$0xff] }
  0xc6   :  { %610 = vmatpush.bf16.msra.mxu3 %v1227_v14 }
  0xc7   :  { %661 = vmatpush.bf16.msrb.mxu2 %v1231_v21 }
  0xc9   :  { %1053 = vmatmul.msk.bf16.vlgmr.msrb.gmra.mxu3 %vm237_vm1, %v353_v62  ;;  %v1264_v62 = vpop.eup %1263 }
  0xca   :  { %v673_v63 = vmul.f32 16.0, %v1264_v62  ;;  %vm677_vm4 = vweird.f32 %v1264_v62 }
  0xcc   :  { %v674_v0 = vsub.f32 1.0, %v673_v63 }
  0xce   :  { %v675_v1 = vmul.f32 %v1264_v62, %v674_v0 }
  0xd0   :  { %v676_v2 = vadd.f32 %v1264_v62, %v675_v1 }
  0xd2   :  { %v678_v3 = vsel %vm677_vm4, %v1264_v62, %v676_v2 }
 0x13c   :  { %v290_v16 = vpop.f32.mrf.mxu3 }
 0x13d   :  { %v295_v22 = vadd.f32 %v1256_v19, %v290_v16  ;;  %v344_v23 = vpop.f32.mrf.mxu2 }
 0x13f   :  { %v349_v24 = vadd.f32 %v344_v23, %v295_v22  ;;  %v1258_v22 = vld [vmem:[%s1567_s5 + $0x3] ss:$0 sm:$0xff] }
 0x144   :  { %v292_v20 = vpop.f32.mrf.mxu3 }
 0x145   :  { %v296_v27 = vadd.f32 %v1256_v19, %v292_v20  ;;  %v346_v29 = vpop.f32.mrf.mxu2 }
 0x147   :  { %v350_v30 = vadd.f32 %v346_v29, %v296_v27 }
 0x14c   :  { %v398_v25 = vpop.f32.mrf.mxu3 }
 0x14d   :  { %v403_v26 = vadd.f32 %v398_v25, %v349_v24  ;;  %v1259_v24 = vld [vmem:[%s1567_s5 + $0x4] ss:$0 sm:$0xff] }
 0x14f   :  { %v405_v28 = vmax.f32 %v403_v26, 0.0 }
 0x151   :  { %407 = vst.msk [vmem:[#allocation3] sm:$0xff] %vm237_vm1, %v405_v28 }
 0x154   :  { %v400_v31 = vpop.f32.mrf.mxu3 }
 0x155   :  { %v404_v32 = vadd.f32 %v400_v31, %v350_v30 }
 0x157   :  { %v406_v33 = vmax.f32 %v404_v32, 0.0 }
 0x158   :  { %v413_v34 = vld [vmem:[#allocation3] sm:$0x3]  ;;  %v464_v35 = vld [vmem:[#allocation3 + $0x2] sm:$0x3]  ;;  %v515_v36 = vld [vmem:[#allocation3 + $0x4] sm:$0x3] }
 0x159   :  { %409 = vst.msk [vmem:[#allocation3 + $0x8] sm:$0x3] %vm408_vm2, %v406_v33  ;;  %v414_v37 = vpack.c.bf16 %v413_v34, %v413_v34  ;;  %v465_v38 = vpack.c.bf16 %v464_v35, %v464_v35  ;;  %v516_v39 = vpack.c.bf16 %v515_v36, %v515_v36  ;;  %v566_v40 = vld [vmem:[#allocation3 + $0x6] sm:$0x3] }
 0x15a   :  { %v567_v41 = vpack.c.bf16 %v566_v40, %v566_v40 }
 0x15b   :  { %1070 = vmatmul.msk.bf16.vlgmr.msra.gmra.mxu2 %vm237_vm1, %v414_v37  ;;  %1087 = vmatmul.msk.bf16.vlgmr.msrb.gmra.mxu0 %vm237_vm1, %v465_v38 }
 0x15c   :  { %1104 = vmatmul.msk.bf16.vlgmr.msrb.gmra.mxu1 %vm237_vm1, %v516_v39  ;;  %1121 = vmatmul.msk.bf16.vlgmr.msra.gmra.mxu3 %vm237_vm1, %v567_v41 }
 0x15d   :  { %893 = vmatpush.bf16.msra.mxu2 %v1243_v9 }
 0x160   :  { %v617_v42 = vld [vmem:[#allocation3 + $0x8] sm:$0x3] }
 0x161   :  { %v618_v43 = vpack.c.bf16 %v617_v42, %v617_v42  ;;  %894 = vmatpush.bf16.msra.mxu2 %v1242_v10 }
 0x165   :  { %895 = vmatpush.bf16.msra.mxu2 %v1241_v11 }
 0x16b   :  { %1138 = vmatmul.msk.bf16.vlgmr.msrb.gmra.mxu2 %vm237_vm1, %v618_v43  ;;  %1142 = vmatmul.msk.bf16.vlgmr.msra.gmra.mxu0 %vm753_vm6, %v751_v12  ;;  %v1260_v12 = vld [vmem:[%s1567_s5 + $0x5] ss:$0 sm:$0xff]  ;;  %vm912_vm6 = vcmask 255120  }
 0x1d8   :  { %v510_v44 = vpop.f32.mrf.mxu0 }
 0x1d9   :  { %v561_v45 = vpop.f32.mrf.mxu1 }
 0x1de   :  { %v459_v47 = vpop.f32.mrf.mxu2 }
 0x1df   :  { %v612_v48 = vpop.f32.mrf.mxu3  ;;  %v463_v50 = vadd.f32 %v1257_v46, %v459_v47 }
 0x1e0   :  { %v512_v49 = vpop.f32.mrf.mxu0 }
 0x1e1   :  { %v563_v51 = vpop.f32.mrf.mxu1  ;;  %v514_v52 = vadd.f32 %v510_v44, %v463_v50 }
 0x1e3   :  { %v565_v55 = vadd.f32 %v561_v45, %v514_v52 }
 0x1e5   :  { %v616_v56 = vadd.f32 %v612_v48, %v565_v55 }
 0x1e6   :  { %v461_v53 = vpop.f32.mrf.mxu2 }
 0x1e7   :  { %v614_v54 = vpop.f32.mrf.mxu3 }
 0x1ee   :  { %v663_v57 = vpop.f32.mrf.mxu2 }
 0x1ef   :  { %v667_v58 = vadd.f32 %v663_v57, %v616_v56 }
 0x1f1   :  { %v669_v59 = vsel %vm668_vm3, %v667_v58, 0.0 }
 0x1f2   :  { %670 = vadd.xlane.f32.xlu0 %v669_v59 }
 0x1f6   :  { %v665_v60 = vpop.f32.mrf.mxu2 }
 0x265   :  { %v671_v4 = vpop.xlane.xlu0 %670 }
 0x266   :  { %v679_v5 = vmul.f32 %v678_v3, %v671_v4  ;;  %v1238_v4 = vld [vmem:[%s1569_s4 + $0x20] sm:$0xff] }
 0x268   :  { %v680_v6 = vsub.f32 %v667_v58, %v679_v5  ;;  %v770_v5 = vpop.f32.mrf.mxu0 }
 0x26a   :  { %v681_v7 = vmul.f32 %v680_v6, %v680_v6 }
 0x26c   :  { %v682_v8 = vsel %vm668_vm3, %v681_v7, 0.0  ;;  %v1237_v7 = vld [vmem:[%s1569_s4 + $0x18] sm:$0xff] }
 0x26d   :  { %683 = vadd.xlane.f32.xlu0 %v682_v8  ;;  %v1236_v8 = vld [vmem:[%s1569_s4 + $0x10] sm:$0xff] }
 0x2e0   :  { %v684_v13 = vpop.xlane.xlu0 %683 }
 0x2e1   :  { %v685_v14 = vmul.f32 %v684_v13, %v678_v3  ;;  %v1239_v3 = vld [vmem:[%s1569_s4 + $0x28] sm:$0xff] }
 0x2e2   :  { %843 = vmatpush.bf16.msrb.mxu3 %v1239_v3 }
 0x2e3   :  { %v686_v15 = vadd.f32 1e-05, %v685_v14 }
 0x2e5   :  { %1265 = vrsqrt.f32 %v686_v15  ;;  %vm693_vm8 = vweird.f32 %v686_v15 }
 0x2e6   :  { %844 = vmatpush.bf16.msrb.mxu3 %v1238_v4 }
 0x2ea   :  { %845 = vmatpush.bf16.msrb.mxu3 %v1237_v7 }
 0x2eb   :  { %v1266_v16 = vpop.eup %1265 }
 0x2ec   :  { %v688_v17 = vmul.f32 %v1266_v16, %v686_v15  ;;  %vm694_vm7 = vweird.f32 %v1266_v16 }
 0x2ed   :  { %vm695_vm9 = vmor %vm693_vm8, %vm694_vm7 }
 0x2ee   :  { %v689_v18 = vmul.f32 %v1266_v16, %v688_v17  ;;  %846 = vmatpush.bf16.msrb.mxu3 %v1236_v8 }
 0x2f0   :  { %v690_v19 = vmul.f32 0.5, %v689_v18 }
 0x2f2   :  { %v691_v20 = vsub.f32 1.5, %v690_v19  ;;  %v1240_v19 = vld [vmem:[%s1569_s4 + $0x30] sm:$0xff] }
 0x2f3   :  { %896 = vmatpush.bf16.msra.mxu2 %v1240_v19 }
 0x2f4   :  { %v692_v21 = vmul.f32 %v1266_v16, %v691_v20  ;;  %v1261_v20 = vld [vmem:[%s1567_s5 + $0x6] ss:$0 sm:$0xff] }
 0x2f6   :  { %v696_v23 = vsel %vm695_vm9, %v1266_v16, %v692_v21 }
 0x2f7   :  { %v697_v25 = vmul.f32 %v696_v23, %v680_v6  ;;  %v772_v6 = vpop.f32.mrf.mxu0 }
 0x2f9   :  { %v700_v26 = vmul.f32 %v1258_v22, %v697_v25 }
 0x2fb   :  { %v703_v27 = vadd.f32 %v1259_v24, %v700_v26  ;;  %v1262_v26 = vld [vmem:[%s1567_s5 + $0x7] ss:$0 sm:$0xff] }
 0x2fd   :  { %1267 = vtanh.f32 %v703_v27 }
 0x303   :  { %v1268_v28 = vpop.eup %1267 }
 0x304   :  { %v1246_v29 = vcvt.f32.s32 %v1268_v28  ;;  %v1244_v31 = vand.u32 2147483647, %v1268_v28  ;;  %v1249_v33 = vand.u32 2147483648, %v1268_v28 }
 0x306   :  { %v1247_v30 = vcvt.s32.f32 %v1246_v29  ;;  %vm1245_vm10 = vcmp.lt.f32.partialorder %v1244_v31, 8388608.0  ;;  %v1279_v31 = vmov 0.0  }
 0x308   :  { %v1248_v32 = vand.u32 2147483647, %v1247_v30 }
 0x30a   :  { %v1250_v34 = vor.u32 %v1249_v33, %v1248_v32 }
 0x30c   :  { %v1251_v35 = vsel %vm1245_vm10, %v1250_v34, %v1268_v28 }
 0x30d   :  { %v706_v36 = vadd.f32 0.5, %v1251_v35  ;;  %v1140_v37 = vadd.f32 -0.5, %v1251_v35  ;;  %v748_v38 = vpack.c.bf16 %v1251_v35, %v1251_v35 }
 0x30f   :  { %v1139_v39 = vmul.f32 -1.442695, %v706_v36  ;;  %v1141_v40 = vmul.f32 -1.442695, %v1140_v37  ;;  %1147 = vmatmul.msk.bf16.vlgmr.msra.gmra.mxu1 %vm780_vm11, %v748_v38 }
 0x311   :  { %1269 = vpow2.f32 %v1139_v39 }
 0x312   :  { %1271 = vpow2.f32 %v1141_v40 }
 0x317   :  { %v1270_v41 = vpop.eup %1269 }
 0x318   :  { %v1272_v42 = vpop.eup %1271  ;;  %v710_v43 = vadd.f32 1.0, %v1270_v41 }
 0x319   :  { %v730_v44 = vadd.f32 1.0, %v1272_v42 }
 0x31a   :  { %1273 = vrcp.f32 %v710_v43  ;;  %v722_v50 = vand.u32 2147483648, %v710_v43  ;;  %v720_v53 = vand.u32 2147483647, %v710_v43  ;;  %vm716_vm14 = vweird.f32 %v710_v43 }
 0x31b   :  { %1275 = vrcp.f32 %v730_v44  ;;  %v742_v54 = vand.u32 2147483648, %v730_v44  ;;  %v740_v56 = vand.u32 2147483647, %v730_v44  ;;  %vm736_vm0 = vweird.f32 %v730_v44 }
 0x31c   :  { %v723_v58 = vor.u32 1.1754944e-38, %v722_v50  ;;  %vm721_vm2 = vcmp.eq.f32.partialorder %v720_v53, 8.507059e+37 }
 0x31d   :  { %v743_v61 = vor.u32 1.1754944e-38, %v742_v54  ;;  %vm741_vm5 = vcmp.eq.f32.partialorder %v740_v56, 8.507059e+37 }
 0x320   :  { %v1274_v45 = vpop.eup %1273 }
 0x321   :  { %v1276_v46 = vpop.eup %1275  ;;  %v712_v47 = vmul.f32 %v1274_v45, %v710_v43  ;;  %vm717_vm12 = vweird.f32 %v1274_v45 }
 0x322   :  { %v732_v48 = vmul.f32 %v1276_v46, %v730_v44  ;;  %vm737_vm13 = vweird.f32 %v1276_v46  ;;  %vm718_vm15 = vmor %vm716_vm14, %vm717_vm12 }
 0x323   :  { %v713_v49 = vsub.f32 1.0, %v712_v47  ;;  %vm738_vm4 = vmor %vm736_vm0, %vm737_vm13 }
 0x324   :  { %v733_v51 = vsub.f32 1.0, %v732_v48 }
 0x325   :  { %v714_v52 = vmul.f32 %v1274_v45, %v713_v49 }
 0x326   :  { %v734_v55 = vmul.f32 %v1276_v46, %v733_v51 }
 0x327   :  { %v715_v57 = vadd.f32 %v1274_v45, %v714_v52 }
 0x328   :  { %v735_v59 = vadd.f32 %v1276_v46, %v734_v55 }
 0x329   :  { %v719_v60 = vsel %vm718_vm15, %v1274_v45, %v715_v57 }
 0x32a   :  { %v724_v62 = vsel %vm721_vm2, %v723_v58, %v719_v60  ;;  %v739_v63 = vsel %vm738_vm4, %v1276_v46, %v735_v59 }
 0x32b   :  { %v744_v0 = vsel %vm741_vm5, %v743_v61, %v739_v63 }
 0x32c   :  { %v746_v1 = vsub.f32 %v724_v62, %v744_v0 }
 0x32e   :  { %v747_v2 = vmax.f32 %v746_v1, 1e-09 }
 0x330   :  { %905 = vst.msk [vmem:[%s1571_s6] sm:$0x3] %vm668_vm3, %v747_v2  ;;  %vm910_vm3 = vcmask 140416  }
 0x38c   :  { %v793_v13 = vpop.f32.mrf.mxu1 }
 0x38d   :  { %v794_v14 = vadd.f32 %v793_v13, %v770_v5 }
 0x38f   :  { %v799_v15 = vadd.f32 %v1260_v12, %v794_v14 }
 0x391   :  { %v800_v16 = vmax.f32 %v799_v15, 0.0 }
 0x393   :  { %v801_v17 = vpack.c.bf16 %v800_v16, %v800_v16 }
 0x394   :  { %v795_v18 = vpop.f32.mrf.mxu1 }
 0x395   :  { %1164 = vmatmul.msk.bf16.vlgmr.msrb.gmra.mxu3 %vm237_vm1, %v801_v17 }
 0x418   :  { %v848_v21 = vpop.f32.mrf.mxu3 }
 0x419   :  { %v849_v22 = vadd.f32 %v1261_v20, %v848_v21 }
 0x41b   :  { %v852_v23 = vmax.f32 %v849_v22, 0.0 }
 0x41d   :  { %v853_v24 = vpack.c.bf16 %v852_v23, %v852_v23 }
 0x41f   :  { %1181 = vmatmul.msk.bf16.vlgmr.msra.gmra.mxu2 %vm237_vm1, %v853_v24 }
 0x420   :  { %v850_v25 = vpop.f32.mrf.mxu3 }
 0x4a2   :  { %v898_v27 = vpop.f32.mrf.mxu2 }
 0x4a3   :  { %v904_v28 = vadd.f32 %v1262_v26, %v898_v27 }
 0x4a5   :  { %907 = vrot.lane.b32.xlu1 %v904_v28, %s1278_s19 }
 0x4aa   :  { %v900_v29 = vpop.f32.mrf.mxu2 }
 0x517   :  { %v908_v30 = vpop.permute.xlu1 %907 }
 0x518   :  { %911 = vst.msk [vmem:[%s1571_s6] sm:$0x3] %vm910_vm3, %v908_v30 }
 0x519   :  { %913 = vst.msk [vmem:[%s1571_s6] sm:$0x3] %vm912_vm6, %v1279_v31 }

</bundles_post_ra>
